<compile_context>
chip_gen: v6e
topology: v6e:2x2x1
jax: 0.10.0
libtpu: 0.0.40
codegen_flags: <defaults>
</compile_context>

<pallas_src>
import jax
import jax.numpy as jnp
from jax import lax
from jax.experimental import pallas as pl
from jax.experimental.pallas import tpu as pltpu

# ---- small, module-consistent shapes -------------------------------------
B = 2        # batch
C = 4        # image channels
H = W = 16   # spatial
P = 8        # patch size  -> N_PATCH = (H//P)*(W//P) = 4
D = 32       # embed dim
V = 64       # text vocab size
L = 8        # text sequence length

N_PATCH = (H // P) * (W // P)
K = C * P * P            # flattened patch length
SEQ_OUT = N_PATCH + L    # concat length (dim=1)


# ---- Pallas kernel ---------------------------------------------------------
def encoder_kernel(ids_ref, patch_ref, w_ref, bias_ref, tab_ref, out_ref):
    """Single grid step processes the whole batch.

    ids_ref   : VMEM i32 [B*L, 1]        flattened token ids
    patch_ref : VMEM f32 [B*N_PATCH, K]  flattened patches (whole batch)
    w_ref     : VMEM f32 [K, D]          flattened conv weight
    bias_ref  : VMEM f32 [1, D]
    tab_ref   : VMEM f32 [V, D]          text embedding table
    out_ref   : VMEM f32 [B*SEQ_OUT, D]  per-batch [vision ; text] row blocks
    """
    # Vision patch embedding: one batched MXU matmul for all B*N_PATCH patches.
    vis = jnp.dot(patch_ref[...], w_ref[...], preferred_element_type=jnp.float32)
    vis = vis + bias_ref[...]                                   # (B*N_PATCH, D)

    # Text embedding: one-hot gather as a single MXU matmul.
    # (Out-of-range ids produce a zero row instead of an OOB read.)
    ids = ids_ref[...]                                          # (B*L, 1) i32
    onehot = (lax.broadcasted_iota(jnp.int32, (B * L, V), 1) == ids)
    txt = jnp.dot(onehot.astype(jnp.float32), tab_ref[...],
                  preferred_element_type=jnp.float32)           # (B*L, D)

    # Fused concat: contiguous block stores at static offsets (2 per batch elem).
    for b in range(B):  # B is tiny & static -- unrolled at trace time
        o = b * SEQ_OUT
        out_ref[o:o + N_PATCH, :] = vis[b * N_PATCH:(b + 1) * N_PATCH, :]
        out_ref[o + N_PATCH:o + SEQ_OUT, :] = txt[b * L:(b + 1) * L, :]


def vision_language_encoder(textual_tokens, visual_tokens, conv_w, conv_b, table):
    """Wrapper: patch extraction (glue) + fused Pallas kernel.

    textual_tokens: int32 [B, L]
    visual_tokens : f32   [B, C, H, W]   (NCHW, like PyTorch)
    conv_w        : f32   [D, C, P, P]   (PyTorch Conv2d weight layout, OIHW)
    conv_b        : f32   [D]
    table         : f32   [V, D]
    returns       : f32   [B, N_PATCH + L, D]
    """
    # --- glue: extract non-overlapping patches (matches Conv2d stride=P) ---
    x = visual_tokens.reshape(B, C, H // P, P, W // P, P)
    x = jnp.transpose(x, (0, 2, 4, 1, 3, 5))          # [B, H/P, W/P, C, P, P]
    patches = x.reshape(B * N_PATCH, K)               # patch vec ordered (C, ph, pw)

    w_flat = conv_w.reshape(D, K).T                   # [K, D]
    bias2d = conv_b.reshape(1, D)
    ids2d = textual_tokens.reshape(B * L, 1).astype(jnp.int32)

    # NOTE: the full embedding table fits easily in VMEM at these toy shapes
    # (V=64, D=32 -> 8 KB). For realistic vocab sizes keep it in HBM
    # (memory_space=pl.ANY) and DMA only the needed rows.
    out2d = pl.pallas_call(
        encoder_kernel,
        out_shape=jax.ShapeDtypeStruct((B * SEQ_OUT, D), jnp.float32),
        grid=(1,),  # whole problem in one kernel invocation
        in_specs=[
            pl.BlockSpec((B * L, 1), lambda i: (0, 0)),        # ids
            pl.BlockSpec((B * N_PATCH, K), lambda i: (0, 0)),  # patches
            pl.BlockSpec((K, D), lambda i: (0, 0)),            # conv weight
            pl.BlockSpec((1, D), lambda i: (0, 0)),            # conv bias
            pl.BlockSpec((V, D), lambda i: (0, 0)),            # embedding table
        ],
        out_specs=pl.BlockSpec((B * SEQ_OUT, D), lambda i: (0, 0)),
        compiler_params=pltpu.CompilerParams(
            dimension_semantics=("arbitrary",)),
    )(ids2d, patches, w_flat, bias2d, table)

    # Free reshape in XLA back to the module's [B, SEQ_OUT, D] layout.
    return out2d.reshape(B, SEQ_OUT, D)


# ---- reference (pure JAX) for correctness check ---------------------------
def reference(textual_tokens, visual_tokens, conv_w, conv_b, table):
    # vision: Conv2d(C, D, kernel=P, stride=P) then flatten(2).transpose(1,2)
    conv = lax.conv_general_dilated(
        visual_tokens, conv_w, window_strides=(P, P), padding="VALID",
        dimension_numbers=("NCHW", "OIHW", "NCHW"))          # [B, D, H/P, W/P]
    vis = conv.reshape(B, D, N_PATCH).transpose(0, 2, 1) + conv_b[None, None, :]
    # text: embedding lookup
    txt = table[textual_tokens]                              # [B, L, D]
    return jnp.concatenate([vis, txt], axis=1)               # concat on dim=1


if __name__ == "__main__":
    key = jax.random.PRNGKey(0)
    k_img, k_ids, k_w, k_b, k_tab = jax.random.split(key, 5)

    visual_tokens = jax.random.normal(k_img, (B, C, H, W), dtype=jnp.float32)
    textual_tokens = jax.random.randint(k_ids, (B, L), 0, V, dtype=jnp.int32)

    # deterministic synthetic parameters (shapes from the module's submodules)
    conv_w = jax.random.normal(k_w, (D, C, P, P), dtype=jnp.float32) * 0.02
    conv_b = jax.random.normal(k_b, (D,), dtype=jnp.float32) * 0.02
    table = jax.random.normal(k_tab, (V, D), dtype=jnp.float32) * 0.02

    # TODO(synk): the `textual_tokens is None` / `visual_tokens is None` dispatch
    # is Python-level control flow; only the both-present fused path is kernelized.
    out = vision_language_encoder(textual_tokens, visual_tokens, conv_w, conv_b, table)
    out = jax.block_until_ready(out)

    ref = reference(textual_tokens, visual_tokens, conv_w, conv_b, table)
    assert out.shape == (B, SEQ_OUT, D), out.shape
    assert jnp.allclose(out, ref, atol=1e-4, rtol=1e-4), "mismatch vs reference"

    print("KERNEL_OK")
</pallas_src>

<mosaic_0001>
module attributes {stable_mosaic.version = 11 : i64} {
  func.func @encoder_kernel(%arg0: i32, %arg1: memref<16x1xi32, #tpu.memory_space<vmem>>, %arg2: memref<8x256xf32, #tpu.memory_space<vmem>>, %arg3: memref<256x32xf32, #tpu.memory_space<vmem>>, %arg4: memref<1x32xf32, #tpu.memory_space<vmem>>, %arg5: memref<64x32xf32, #tpu.memory_space<vmem>>, %arg6: memref<24x32xf32, #tpu.memory_space<vmem>>) attributes {dimension_semantics = [#tpu.dimension_semantics<arbitrary>], iteration_bounds = array<i64: 1>, scalar_prefetch = 0 : i64, scratch_operands = 0 : i64, tpu.core_type = #tpu.core_type<tc>, window_params = [{pipeline_mode = #tpu.pipeline_mode<synchronous>, transform_indices = @transform_0, window_bounds = array<i64: 16, 1>}, {pipeline_mode = #tpu.pipeline_mode<synchronous>, transform_indices = @transform_1, window_bounds = array<i64: 8, 256>}, {pipeline_mode = #tpu.pipeline_mode<synchronous>, transform_indices = @transform_2, window_bounds = array<i64: 256, 32>}, {pipeline_mode = #tpu.pipeline_mode<synchronous>, transform_indices = @transform_3, window_bounds = array<i64: 1, 32>}, {pipeline_mode = #tpu.pipeline_mode<synchronous>, transform_indices = @transform_4, window_bounds = array<i64: 64, 32>}, {pipeline_mode = #tpu.pipeline_mode<synchronous>, transform_indices = @transform_5, window_bounds = array<i64: 24, 32>}]} {
    %c0 = arith.constant 0 : index
    %c0_0 = arith.constant 0 : index
    %0 = vector.load %arg2[%c0, %c0_0] : memref<8x256xf32, #tpu.memory_space<vmem>>, vector<8x256xf32>
    %c0_1 = arith.constant 0 : index
    %c0_2 = arith.constant 0 : index
    %1 = vector.load %arg3[%c0_1, %c0_2] : memref<256x32xf32, #tpu.memory_space<vmem>>, vector<256x32xf32>
    %cst = arith.constant dense<0.000000e+00> : vector<8x32xf32>
    %2 = tpu.matmul %0, %1, %cst {dimension_numbers = #tpu.dot_dimension_numbers<[1], [0], [0], [1], [0, 0, 1, 1], [], []>} : vector<8x256xf32>, vector<256x32xf32>, vector<8x32xf32> -> vector<8x32xf32>
    %c0_3 = arith.constant 0 : index
    %c0_4 = arith.constant 0 : index
    %3 = vector.load %arg4[%c0_3, %c0_4] : memref<1x32xf32, #tpu.memory_space<vmem>>, vector<1x32xf32>
    %4 = vector.broadcast %3 : vector<1x32xf32> to vector<8x32xf32>
    %5 = arith.addf %2, %4 : vector<8x32xf32>
    %c0_5 = arith.constant 0 : index
    %c0_6 = arith.constant 0 : index
    %6 = vector.load %arg1[%c0_5, %c0_6] : memref<16x1xi32, #tpu.memory_space<vmem>>, vector<16x1xi32>
    %7 = tpu.iota {dimensions = array<i32: 1>} : vector<16x64xi32>
    %8 = vector.broadcast %6 : vector<16x1xi32> to vector<16x64xi32>
    %9 = arith.cmpi eq, %7, %8 : vector<16x64xi32>
    %10 = arith.extui %9 : vector<16x64xi1> to vector<16x64xi32>
    %11 = arith.sitofp %10 : vector<16x64xi32> to vector<16x64xf32>
    %c0_7 = arith.constant 0 : index
    %c0_8 = arith.constant 0 : index
    %12 = vector.load %arg5[%c0_7, %c0_8] : memref<64x32xf32, #tpu.memory_space<vmem>>, vector<64x32xf32>
    %cst_9 = arith.constant dense<0.000000e+00> : vector<16x32xf32>
    %13 = tpu.matmul %11, %12, %cst_9 {dimension_numbers = #tpu.dot_dimension_numbers<[1], [0], [0], [1], [0, 0, 1, 1], [], []>} : vector<16x64xf32>, vector<64x32xf32>, vector<16x32xf32> -> vector<16x32xf32>
    %14 = vector.extract_strided_slice %5 {offsets = [0, 0], sizes = [4, 32], strides = [1, 1]} : vector<8x32xf32> to vector<4x32xf32>
    %c0_10 = arith.constant 0 : index
    %c0_11 = arith.constant 0 : index
    %15 = vector.load %arg6[%c0_10, %c0_11] : memref<24x32xf32, #tpu.memory_space<vmem>>, vector<4x32xf32>
    tpu.vector_store %arg6[%c0_10, %c0_11], %14 {strides = array<i32>} : memref<24x32xf32, #tpu.memory_space<vmem>>, vector<4x32xf32>,
    %16 = vector.extract_strided_slice %13 {offsets = [0, 0], sizes = [8, 32], strides = [1, 1]} : vector<16x32xf32> to vector<8x32xf32>
    %c4 = arith.constant 4 : index
    %c0_12 = arith.constant 0 : index
    %17 = vector.load %arg6[%c4, %c0_12] : memref<24x32xf32, #tpu.memory_space<vmem>>, vector<8x32xf32>
    tpu.vector_store %arg6[%c4, %c0_12], %16 {strides = array<i32>} : memref<24x32xf32, #tpu.memory_space<vmem>>, vector<8x32xf32>,
    %18 = vector.extract_strided_slice %5 {offsets = [4, 0], sizes = [4, 32], strides = [1, 1]} : vector<8x32xf32> to vector<4x32xf32>
    %c12 = arith.constant 12 : index
    %c0_13 = arith.constant 0 : index
    %19 = vector.load %arg6[%c12, %c0_13] : memref<24x32xf32, #tpu.memory_space<vmem>>, vector<4x32xf32>
    tpu.vector_store %arg6[%c12, %c0_13], %18 {strides = array<i32>} : memref<24x32xf32, #tpu.memory_space<vmem>>, vector<4x32xf32>,
    %20 = vector.extract_strided_slice %13 {offsets = [8, 0], sizes = [8, 32], strides = [1, 1]} : vector<16x32xf32> to vector<8x32xf32>
    %c16 = arith.constant 16 : index
    %c0_14 = arith.constant 0 : index
    %21 = vector.load %arg6[%c16, %c0_14] : memref<24x32xf32, #tpu.memory_space<vmem>>, vector<8x32xf32>
    tpu.vector_store %arg6[%c16, %c0_14], %20 {strides = array<i32>} : memref<24x32xf32, #tpu.memory_space<vmem>>, vector<8x32xf32>,
    return
  }
  func.func @transform_0(%arg0: i32) -> (i32, i32) {
    %c0_i32 = arith.constant 0 : i32
    %c0_i32_0 = arith.constant 0 : i32
    %c0_i32_1 = arith.constant 0 : i32
    return %c0_i32, %c0_i32_0 : i32, i32
  }
  func.func @transform_1(%arg0: i32) -> (i32, i32) {
    %c0_i32 = arith.constant 0 : i32
    %c0_i32_0 = arith.constant 0 : i32
    %c0_i32_1 = arith.constant 0 : i32
    return %c0_i32, %c0_i32_0 : i32, i32
  }
  func.func @transform_2(%arg0: i32) -> (i32, i32) {
    %c0_i32 = arith.constant 0 : i32
    %c0_i32_0 = arith.constant 0 : i32
    %c0_i32_1 = arith.constant 0 : i32
    return %c0_i32, %c0_i32_0 : i32, i32
  }
  func.func @transform_3(%arg0: i32) -> (i32, i32) {
    %c0_i32 = arith.constant 0 : i32
    %c0_i32_0 = arith.constant 0 : i32
    %c0_i32_1 = arith.constant 0 : i32
    return %c0_i32, %c0_i32_0 : i32, i32
  }
  func.func @transform_4(%arg0: i32) -> (i32, i32) {
    %c0_i32 = arith.constant 0 : i32
    %c0_i32_0 = arith.constant 0 : i32
    %c0_i32_1 = arith.constant 0 : i32
    return %c0_i32, %c0_i32_0 : i32, i32
  }
  func.func @transform_5(%arg0: i32) -> (i32, i32) {
    %c0_i32 = arith.constant 0 : i32
    %c0_i32_0 = arith.constant 0 : i32
    %c0_i32_1 = arith.constant 0 : i32
    return %c0_i32, %c0_i32_0 : i32, i32
  }
}

</mosaic_0001>

<bundles_post_ra>
// kernel: tpu_custom_call.1
= control target key start
LH: loop header
LB: loop body
LE: loop exit
PB: predicated region body
PF: predicated region fallthrough
CT: control target
= control target key end

     0   :  { %v358_v2 = vmov 0   ;;  %s531_s0 = inlined_call_operand.vmem [shape: s32[16,1], index: 0, kind: input, shape index: {}]   ;;  %s532_s1 = inlined_call_operand.vmem [shape: f32[8,256], index: 1, kind: input, shape index: {}]   ;;  %s533_s2 = inlined_call_operand.vmem [shape: f32[256,32], index: 2, kind: input, shape index: {}]   ;;  %s534_s3 = inlined_call_operand.vmem [shape: f32[1,32], index: 3, kind: input, shape index: {}]   ;;  %s535_s4 = inlined_call_operand.vmem [shape: f32[64,32], index: 4, kind: input, shape index: {}]   ;;  %s536_s5 = inlined_call_operand.hbm [shape: f32[24,32], index: 5, kind: output, shape index: {}]  }
   0x1   :  { %v132_v0 = vld [vmem:[%s531_s0] sm:$0xff]  ;;  %v54_v1 = vld [vmem:[%s533_s2 + $0xf8] sm:$0xff]  ;;  %335 = vset.pattern.permute.xlu0 %v358_v2  ;;  %v53_v4 = vld [vmem:[%s533_s2 + $0xf0] sm:$0xff] }
   0x2   :  { %266 = vmatprep.subr.mxu0 %v54_v1  ;;  %v38_v3 = vld [vmem:[%s533_s2 + $0x78] sm:$0xff]  ;;  %v37_v5 = vld [vmem:[%s533_s2 + $0x70] sm:$0xff]  ;;  %137 = vperm.xlu0 %335, %v132_v0   ;;  %v52_v6 = vld [vmem:[%s533_s2 + $0xe8] sm:$0xff] }
   0x3   :  { %267 = vmatpush3.msra.mxu0 %v38_v3  ;;  %v133_v7 = vld [vmem:[%s531_s0 + $0x8] sm:$0xff]  ;;  %v51_v9 = vld [vmem:[%s533_s2 + $0xe0] sm:$0xff]  ;;  %v50_v11 = vld [vmem:[%s533_s2 + $0xd8] sm:$0xff] }
   0x4   :  { %268 = vmatprep.subr.mxu0 %v53_v4  ;;  %v36_v8 = vld [vmem:[%s533_s2 + $0x68] sm:$0xff]  ;;  %v35_v10 = vld [vmem:[%s533_s2 + $0x60] sm:$0xff]  ;;  %v34_v12 = vld [vmem:[%s533_s2 + $0x58] sm:$0xff] }
   0x5   :  { %269 = vmatpush3.msra.mxu0 %v37_v5  ;;  %v49_v13 = vld [vmem:[%s533_s2 + $0xd0] sm:$0xff]  ;;  %v155_v14 = vld [vmem:[%s535_s4 + $0x38] sm:$0xff]  ;;  %v48_v17 = vld [vmem:[%s533_s2 + $0xc8] sm:$0xff] }
   0x6   :  { %270 = vmatprep.subr.mxu0 %v52_v6  ;;  %140 = vperm.xlu0 %335, %v133_v7   ;;  %v33_v15 = vld [vmem:[%s533_s2 + $0x50] sm:$0xff]  ;;  %v153_v18 = vld [vmem:[%s535_s4 + $0x28] sm:$0xff]  ;;  %v47_v20 = vld [vmem:[%s533_s2 + $0xc0] sm:$0xff] }
   0x7   :  { %271 = vmatpush3.msra.mxu0 %v36_v8  ;;  %311 = vmatprep.subr.mxu1 %v155_v14  ;;  %v154_v16 = vld [vmem:[%s535_s4 + $0x30] sm:$0xff]  ;;  %v32_v19 = vld [vmem:[%s533_s2 + $0x48] sm:$0xff]  ;;  %v152_v21 = vld [vmem:[%s535_s4 + $0x20] sm:$0xff] }
   0x8   :  { %272 = vmatprep.subr.mxu0 %v51_v9  ;;  %312 = vmatpush3.msra.mxu1 %v155_v14  ;;  %v31_v22 = vld [vmem:[%s533_s2 + $0x40] sm:$0xff]  ;;  %v46_v23 = vld [vmem:[%s533_s2 + $0xb8] sm:$0xff] }
   0x9   :  { %273 = vmatpush3.msra.mxu0 %v35_v10  ;;  %313 = vmatprep.subr.mxu1 %v154_v16  ;;  %v151_v24 = vld [vmem:[%s535_s4 + $0x18] sm:$0xff] }
   0xa   :  { %274 = vmatprep.subr.mxu0 %v50_v11  ;;  %314 = vmatpush3.msra.mxu1 %v154_v16 }
   0xb   :  { %275 = vmatpush3.msra.mxu0 %v34_v12  ;;  %315 = vmatprep.subr.mxu1 %v153_v18 }
   0xc   :  { %276 = vmatprep.subr.mxu0 %v49_v13  ;;  %316 = vmatpush3.msra.mxu1 %v153_v18 }
   0xd   :  { %277 = vmatpush3.msra.mxu0 %v33_v15 }
   0xe   :  { %278 = vmatprep.subr.mxu0 %v48_v17 }
   0xf   :  { %279 = vmatpush3.msra.mxu0 %v32_v19 }
  0x10   :  { %10 = vsyncpa [#allocation3], 0  ;;  %280 = vmatprep.subr.mxu0 %v47_v20  ;;  %v30_v25 = vld [vmem:[%s533_s2 + $0x38] sm:$0xff]  ;;  %317 = vmatprep.subr.mxu1 %v152_v21  ;;  %v45_v26 = vld [vmem:[%s533_s2 + $0xb0] sm:$0xff]  ;;  %v134_v45 = vlaneseq  ;;  %vm156_vm0 = vcmask 523264   ;;  %v359_v48 = vmov 0.0  }
  0x11   :  { %281 = vmatpush3.msra.mxu0 %v31_v22  ;;  %318 = vmatpush3.msra.mxu1 %v152_v21  ;;  %v22_v27 = vld [vmem:[%s532_s1 + $0x8] sm:$0xff]  ;;  %v29_v28 = vld [vmem:[%s533_s2 + $0x30] sm:$0xff]  ;;  %v43_v33 = vld [vmem:[%s533_s2 + $0xa0] sm:$0xff]  ;;  %vm238_vm3 = vcmask 257024   ;;  %vm242_vm4 = vcmask 261124   ;;  %vm240_vm5 = vcmask 261120  }
  0x12   :  { %282 = vmatprep.subr.mxu0 %v46_v23  ;;  %319 = vmatprep.subr.mxu1 %v151_v24  ;;  %v150_v29 = vld [vmem:[%s535_s4 + $0x10] sm:$0xff]  ;;  %v44_v30 = vld [vmem:[%s533_s2 + $0xa8] sm:$0xff]  ;;  %v27_v34 = vld [vmem:[%s533_s2 + $0x20] sm:$0xff]  ;;  %v135_v46 = vand.u32 127, %v134_v45 }
  0x13   :  { %283 = vmatpush3.msra.mxu0 %v30_v25  ;;  %320 = vmatpush3.msra.mxu1 %v151_v24  ;;  %v28_v31 = vld [vmem:[%s533_s2 + $0x28] sm:$0xff]  ;;  %v148_v35 = vld [vmem:[%s535_s4] sm:$0xff]  ;;  %v42_v36 = vld [vmem:[%s533_s2 + $0x98] sm:$0xff] }
  0x14   :  { %284 = vmatprep.subr.mxu0 %v45_v26  ;;  %126 = vmatprep.mubr.f32.mxu0 %v22_v27  ;;  %v149_v32 = vld [vmem:[%s535_s4 + $0x8] sm:$0xff]  ;;  %v26_v37 = vld [vmem:[%s533_s2 + $0x18] sm:$0xff]  ;;  %v41_v38 = vld [vmem:[%s533_s2 + $0x90] sm:$0xff] }
  0x15   :  { %285 = vmatpush3.msra.mxu0 %v29_v28  ;;  %321 = vmatprep.subr.mxu1 %v150_v29  ;;  %v25_v39 = vld [vmem:[%s533_s2 + $0x10] sm:$0xff]  ;;  %v40_v40 = vld [vmem:[%s533_s2 + $0x88] sm:$0xff]  ;;  %v39_v42 = vld [vmem:[%s533_s2 + $0x80] sm:$0xff] }
  0x16   :  { %286 = vmatprep.subr.mxu0 %v44_v30  ;;  %322 = vmatpush3.msra.mxu1 %v150_v29  ;;  %v24_v41 = vld [vmem:[%s533_s2 + $0x8] sm:$0xff]  ;;  %v23_v43 = vld [vmem:[%s533_s2] sm:$0xff] }
  0x17   :  { %287 = vmatpush3.msra.mxu0 %v28_v31  ;;  %323 = vmatprep.subr.mxu1 %v149_v32  ;;  %v21_v44 = vld [vmem:[%s532_s1] sm:$0xff]  ;;  %s360_s1 = smov [#allocation2]  }
  0x18   :  { %288 = vmatprep.subr.mxu0 %v43_v33  ;;  %324 = vmatpush3.msra.mxu1 %v149_v32  ;;  %v261_v53 = vld [vmem:[%s534_s3] ss:$0 sm:$0xff]  ;;  %s250_s28 = sshll.u32 %s360_s1, 4  ;;  %s251_s28 = int_to_ptr.vmem [resolvable:$true] %s250_s28 }
  0x19   :  { %289 = vmatpush3.msra.mxu0 %v27_v34  ;;  %325 = vmatprep.subr.mxu1 %v148_v35  ;;  %s336_s29 = scalar_lea.vmem %s251_s28, 384  ;;  %p341_p1 = scmp.lt.s32.totalorder %s251_s28, %s251_s28 }
  0x1a   :  { %290 = vmatprep.subr.mxu0 %v42_v36  ;;  %326 = vmatpush3.msra.mxu1 %v148_v35  ;;  %p337_p0 = scmp.ne.s32.totalorder %s251_s28, %s336_s29  ;;  %p342_p2 = scmp.lt.s32.totalorder %s336_s29, %s336_s29 }
  0x1b   :  { %291 = vmatpush3.msra.mxu0 %v26_v37 }
  0x1c   :  { %292 = vmatprep.subr.mxu0 %v41_v38  ;;  %p343_p3 = por %p342_p2, %p341_p1 }
  0x1d   :  { %293 = vmatpush3.msra.mxu0 %v25_v39 }
  0x1e   :  { %294 = vmatprep.subr.mxu0 %v40_v40  ;;  %p344_p4 = pnand %p343_p3, %p337_p0 }
  0x1f   :  { %295 = vmatpush3.msra.mxu0 %v24_v41 }
  0x20   :  { %296 = vmatprep.subr.mxu0 %v39_v42 }
  0x21   :  { %297 = vmatpush3.msra.mxu0 %v23_v43 }
  0x22   :  { %127 = vmatmul.mubr.f32.vlgmr.msra.gmra.mxu0 %v21_v44 }
  0x7d   :  { %v138_v47 = vpop.permute.xlu0 %137 }
  0x7e   :  { %vm142_vm1 = vcmp.eq.s32.totalorder %v135_v46, %v138_v47 }
  0x7f   :  { %v262_v49 = vsel %vm142_vm1, 1.0, %v359_v48 }
  0x80   :  { %327 = vmatprep.mubr.msk.f32.mxu1 %vm156_vm0, %v262_v49 }
  0x81   :  { %v141_v50 = vpop.permute.xlu0 %140 }
  0x82   :  { %vm143_vm2 = vcmp.eq.s32.totalorder %v135_v46, %v141_v50 }
  0x83   :  { %v263_v51 = vsel %vm143_vm2, 1.0, %v359_v48 }
  0x84   :  { %328 = vmatmul.mubr.msk.f32.vlgmr.msra.gmra.mxu1 %vm156_vm0, %v263_v51 }
  0xe2   :  { %v298_v52 = vpop.f32.mrf.mxu0 }
  0xe4   :  { %v299_v54 = vpop.f32.mrf.mxu0 }
  0xe5   :  { %v300_v55 = vadd.f32 %v299_v54, %v298_v52 }
  0xe7   :  { %v129_v56 = vadd.f32 %v300_v55, %v261_v53 }
  0xe9   :  { %239 = vst.msk [vmem:[#allocation2] sm:$0xf] %vm238_vm3, %v129_v56 }
  0xea   :  { %243 = vst.msk [vmem:[#allocation2 + $0x8] sm:$0xf0] %vm242_vm4, %v129_v56 }
 0x144   :  { %v329_v57 = vpop.f32.mrf.mxu1 }
 0x145   :  { %244 = vst.msk [vmem:[#allocation2 + $0x10] sm:$0xff] %vm240_vm5, %v329_v57 }
 0x146   :  { %v229_v58 = vpop.f32.mrf.mxu1 }
 0x147   :  { %241 = vst.msk [vmem:[#allocation2 + $0x4] sm:$0xff] %vm240_vm5, %v229_v58 }
 0x148   :  { %347 = shalt.err (!%p344_p4)
}
 0x149   :  { %s361_s3 = smov 128   ;;  %s362_s30 = smov 8  }
 0x14a   :  { %256 = dma.vmem_to_hbm [thread:$0]  %s251_s28, 384, %s536_s5, [#allocation3], %s361_s3, %s361_s3, %s362_s30  }
 0x14b   :  { %356 = dma.done.wait [#allocation3], 384  }
 0x14c   :  { %357 = vsyncadd [#allocation3], 4294966912 }
 0x14d   :  { %260 = vsyncpa [#allocation3], 1 }

</bundles_post_ra>
